<compile_context>
chip_gen: v7x
topology: tpu7x:2x2x1
jax: 0.10.0
libtpu: 0.0.40
codegen_flags: <defaults>
</compile_context>

<pallas_src>
import functools

import jax
import jax.numpy as jnp
import numpy as np
from jax.experimental import pallas as pl
from jax.experimental.pallas import tpu as pltpu

_CLIP_MIN = 1e-4                                   # clamp floor for (soft) labels
_LOG_CLIP_MIN = float(np.log(np.float32(_CLIP_MIN)))
_EPS = 1e-12


def _round_up(x, m):
    return ((x + m - 1) // m) * m


def _pick_batch_tile(b, c, n_row_streams, itemsize):
    """Largest batch tile (up to 2048 rows) whose double-buffered class-wide
    input streams plus the ~6 live f32 (TB, C) intermediates stay inside a
    conservative scoped-VMEM budget valid on v5e / v6e / v7x."""
    budget = 20 * 1024 * 1024

    def need(t):
        dma = 2 * n_row_streams * t * c * itemsize     # double-buffered inputs
        live = 6 * t * c * 4                           # f32 body intermediates
        return dma + live

    tb = 2048
    while tb > 8 and need(tb) > budget:
        tb //= 2
    if b > 8:
        # keep at least 2 grid steps so v7x megacore gets both cores work
        tb = min(tb, _round_up((b + 1) // 2, 8))
    if tb >= b:
        return b                       # single full-batch tile (block == full dim)
    return max(8, (tb // 8) * 8)       # multiple of 8, ragged last block is masked


def _nal_tile_kernel(nrows_ref, conf_ref, logits_ref, tgt_ref, part_ref, *,
                     beta, target_is_labels):
    """Per-tile partial sums of the NAL loss.

    Inputs (VMEM tiles; upcast to f32 right after load):
      conf_ref   (TB, 1)  raw confidence logits
      logits_ref (TB, C)  classification logits
      tgt_ref    (TB, 1) int32 labels      [if target_is_labels]
                 (TB, C) soft labels       [otherwise]
    Output: one lane-dense (1, 8, 128) block per tile:
      sublane 0 -> sum_{rows,cols} [ log(pred)*target + beta*pred*log(target) ]
      sublane 1 -> sum_{rows} log(sigmoid(confidence))
    """
    # ---- confidence branch (sigmoid -> EUP) ----
    conf = jax.nn.sigmoid(conf_ref[...].astype(jnp.float32))        # (TB, 1)
    conf = jnp.clip(conf, _EPS, 1.0 - _EPS)

    # ---- softmax over the class (lane) axis ----
    logits = logits_ref[...].astype(jnp.float32)                    # (TB, C)
    tb, c = logits.shape
    z = logits - jnp.max(logits, axis=1, keepdims=True)
    ez = jnp.exp(z)
    inv_den = pl.reciprocal(jnp.sum(ez, axis=1, keepdims=True), approx=True)
    probs = jnp.clip(ez * inv_den, _EPS, 1.0 - _EPS)

    if target_is_labels:
        # Build the clamped one-hot and its log in-register (no (B,C) stream).
        labels = tgt_ref[...]                                       # (TB, 1) int32
        col = jax.lax.broadcasted_iota(jnp.int32, (tb, c), 1)
        is_hot = col == labels                                      # (TB, C) bool
        target = jnp.where(is_hot, jnp.float32(1.0), jnp.float32(_CLIP_MIN))
        log_target = jnp.where(is_hot, jnp.float32(0.0),
                               jnp.float32(_LOG_CLIP_MIN))
    else:
        target = tgt_ref[...].astype(jnp.float32)                   # (TB, C)
        # log in-kernel (EUP slack) instead of streaming a cached log array.
        log_target = jnp.log(target)

    # pred = conf * softmax(logits) + (1 - conf) * target
    pred = jnp.clip(conf * probs + (1.0 - conf) * target, 1e-7, 1.0)

    # Fused row reduction: one XLU pass covers both loss1 and the rce term.
    fused = jnp.log(pred) * target + beta * (pred * log_target)     # (TB, C)
    fused_rows = jnp.sum(fused, axis=1, keepdims=True)              # (TB, 1)
    log_conf = jnp.log(conf)                                        # (TB, 1)

    # Mask rows beyond the true batch size (ragged last tile is NOT padded
    # upstream; use where so garbage/NaN tails can't poison the tile sum).
    row = pl.program_id(0) * tb + jax.lax.broadcasted_iota(jnp.int32, (tb, 1), 0)
    valid = row < nrows_ref[0]
    fused_sum = jnp.sum(jnp.where(valid, fused_rows, 0.0))
    logc_sum = jnp.sum(jnp.where(valid, log_conf, 0.0))

    # Single merged output block: sublane 0 = fused sum, sublanes 1.. = logc sum.
    sub = jax.lax.broadcasted_iota(jnp.int32, (1, 8, 128), 1)
    fused_b = jnp.broadcast_to(fused_sum.astype(jnp.float32), (1, 8, 128))
    logc_b = jnp.broadcast_to(logc_sum.astype(jnp.float32), (1, 8, 128))
    part_ref[...] = jnp.where(sub == 0, fused_b, logc_b)


def nal_loss_pallas(confidence, logits, lam, beta, *, labels=None, target=None):
    """Batch-tiled Pallas NAL loss + tiny JAX epilogue (sum of tile partials).

    Exactly one of `labels` (int, (B,)) or `target` ((B, C) soft labels) must
    be given; with `labels` the clamped one-hot is built inside the kernel.
    """
    assert (labels is None) != (target is None)
    b, c = logits.shape
    confidence = jnp.reshape(confidence, (b, 1))
    use_labels = labels is not None

    n_row_streams = 1 if use_labels else 2
    itemsize = max(logits.dtype.itemsize,
                   4 if use_labels else target.dtype.itemsize)
    tb = _pick_batch_tile(b, c, n_row_streams, itemsize)
    num_tiles = -(-b // tb)
    nrows = jnp.asarray([b], dtype=jnp.int32)

    # TODO(synk): for production, the class axis should be produced lane-dense
    # (multiple of 128) upstream; C << 128 wastes vector-lane occupancy.

    row_spec = pl.BlockSpec((tb, c), lambda i: (i, 0))
    col1_spec = pl.BlockSpec((tb, 1), lambda i: (i, 0))
    in_specs = [
        pl.BlockSpec(memory_space=pltpu.MemorySpace.SMEM),    # nrows (scalar)
        col1_spec,                                            # confidence
        row_spec,                                             # logits
    ]
    if use_labels:
        third = jnp.reshape(labels.astype(jnp.int32), (b, 1))
        in_specs.append(col1_spec)                            # int32 labels
    else:
        third = target
        in_specs.append(row_spec)                             # soft labels

    part = pl.pallas_call(
        functools.partial(_nal_tile_kernel, beta=float(beta),
                          target_is_labels=use_labels),
        grid=(num_tiles,),
        in_specs=in_specs,
        out_specs=pl.BlockSpec((1, 8, 128), lambda i: (i, 0, 0)),
        out_shape=jax.ShapeDtypeStruct((num_tiles, 8, 128), jnp.float32),
        compiler_params=pltpu.CompilerParams(
            dimension_semantics=("parallel",),      # shards tiles across v7x TCs
            vmem_limit_bytes=32 * 1024 * 1024,
        ),
    )(nrows, confidence, logits, third)

    fused_total = jnp.sum(part[:, 0, 0])
    logc_total = jnp.sum(part[:, 1, 0])
    # loss = loss1 + lam*loss2 + beta*mean(rce) = -(fused + lam*logc)/B
    return -(fused_total + lam * logc_total) / jnp.float32(b)


class NAL:
    """JAX/Pallas port of the PyTorch NAL module (soft labels kept as jnp
    arrays on the object, updated functionally)."""

    def __init__(self, labels, num_classes, es=60, momentum=0.9, beta=0.1,
                 threshold_update=0.0):
        labels = jnp.asarray(labels)
        n = labels.shape[0]
        self.num_classes = num_classes
        one_hot = (jnp.zeros((n, num_classes), jnp.float32)
                   .at[jnp.arange(n), labels].set(1.0))
        # TODO(synk): PyTorch keeps an exact (unclipped) one-hot at init; clipping
        # here only differs in the degenerate epoch>=es-before-first-update case
        # where the exact one-hot would give log(0) = -inf in the rce term.
        self.soft_labels = jnp.clip(one_hot, _CLIP_MIN, 1.0)
        self.es = es
        self.momentum = momentum
        self.beta = beta
        self.threshold_update = threshold_update

    def __call__(self, confidence, logits, labels, index, lam, epoch):
        labels = jnp.asarray(labels)
        index = jnp.asarray(index)

        if epoch < self.es:
            # Hot path: labels go straight into the kernel; the clamped one-hot
            # target and its log are synthesized in-register (no (B,C) stream).
            return nal_loss_pallas(confidence, logits, lam, self.beta,
                                   labels=labels)

        if epoch % 10 == 0:
            conf_s = jnp.clip(jax.nn.sigmoid(confidence), _EPS, 1.0 - _EPS)
            temp_p = jax.nn.softmax(logits, axis=1)
            tp_f = (conf_s > self.threshold_update).reshape(-1)        # (B,)
            old_rows = self.soft_labels[index]
            new_rows = (self.momentum * old_rows
                        + (1.0 - self.momentum) * temp_p)
            upd = jnp.where(tp_f[:, None], new_rows, old_rows)
            # TODO(synk): duplicate indices in `index` resolve as last-write-wins,
            # matching PyTorch fancy-assign behavior.
            self.soft_labels = jnp.clip(self.soft_labels.at[index].set(upd),
                                        _CLIP_MIN, 1.0)
        target = self.soft_labels[index]
        # TODO(synk): the wrapper gather materializes one (B,C) array; a
        # scalar-prefetch row gather straight from HBM would remove that pass.
        return nal_loss_pallas(confidence, logits, lam, self.beta, target=target)


def _reference_loss(confidence, logits, target, lam, beta):
    """Pure-JAX reference of the kernel math (for sanity check)."""
    conf = jnp.clip(jax.nn.sigmoid(confidence), _EPS, 1.0 - _EPS)
    probs = jnp.clip(jax.nn.softmax(logits, axis=1), _EPS, 1.0 - _EPS)
    pred = jnp.clip(conf * probs + (1.0 - conf) * target, 1e-7, 1.0)
    loss1 = -jnp.mean(jnp.sum(jnp.log(pred) * target, axis=1))
    rce = -jnp.sum(pred * jnp.log(target), axis=1)
    loss2 = -jnp.mean(jnp.log(conf))
    return loss1 + lam * loss2 + beta * jnp.mean(rce)


if __name__ == "__main__":
    key = jax.random.PRNGKey(0)
    k1, k2, k3 = jax.random.split(key, 3)

    num_samples = 32     # size of the dataset (rows of soft_labels)
    batch = 8
    num_classes = 16

    dataset_labels = jax.random.randint(k1, (num_samples,), 0, num_classes)
    nal = NAL(dataset_labels, num_classes, es=60, momentum=0.9, beta=0.1,
              threshold_update=0.0)

    index = jnp.arange(batch, dtype=jnp.int32)          # which dataset rows
    labels = dataset_labels[index]
    logits = jax.random.normal(k2, (batch, num_classes), jnp.float32)
    confidence = jax.random.normal(k3, (batch, 1), jnp.float32)
    lam = 0.5

    # --- epoch < es path: in-kernel one-hot + closed-form log(target) ---
    loss_early = jax.block_until_ready(
        nal(confidence, logits, labels, index, lam, epoch=0))
    one_hot = jnp.clip(
        jnp.zeros((batch, num_classes), jnp.float32)
        .at[jnp.arange(batch), labels].set(1.0),
        _CLIP_MIN, 1.0)
    ref_early = _reference_loss(confidence, logits, one_hot, lam, 0.1)
    np.testing.assert_allclose(np.asarray(loss_early), np.asarray(ref_early),
                               rtol=5e-3, atol=5e-3)

    # --- epoch >= es path: soft-label update + in-kernel log(target) ---
    loss_late = jax.block_until_ready(
        nal(confidence, logits, labels, index, lam, epoch=60))
    ref_late = _reference_loss(confidence, logits, nal.soft_labels[index],
                               lam, 0.1)
    np.testing.assert_allclose(np.asarray(loss_late), np.asarray(ref_late),
                               rtol=5e-3, atol=5e-3)

    print("KERNEL_OK")
</pallas_src>

<mosaic_0001>
module attributes {stable_mosaic.version = 11 : i64} {
  func.func @_nal_tile_kernel(%arg0: i32, %arg1: memref<1xi32, #tpu.memory_space<smem>>, %arg2: memref<8x1xf32, #tpu.memory_space<vmem>>, %arg3: memref<8x16xf32, #tpu.memory_space<vmem>>, %arg4: memref<8x1xi32, #tpu.memory_space<vmem>>, %arg5: memref<1x8x128xf32, #tpu.memory_space<vmem>>) attributes {dimension_semantics = [#tpu.dimension_semantics<parallel>], iteration_bounds = array<i64: 1>, scalar_prefetch = 0 : i64, scratch_operands = 0 : i64, tpu.core_type = #tpu.core_type<tc>, window_params = [{transform_indices = @transform_0, window_bounds = array<i64: 1>}, {transform_indices = @transform_1, window_bounds = array<i64: 8, 1>}, {transform_indices = @transform_2, window_bounds = array<i64: 8, 16>}, {transform_indices = @transform_3, window_bounds = array<i64: 8, 1>}, {transform_indices = @transform_4, window_bounds = array<i64: 1, 8, 128>}]} {
    %c0 = arith.constant 0 : index
    %c0_0 = arith.constant 0 : index
    %0 = vector.load %arg2[%c0, %c0_0] : memref<8x1xf32, #tpu.memory_space<vmem>>, vector<8x1xf32>
    %1 = arith.negf %0 : vector<8x1xf32>
    %2 = math.exp %1 : vector<8x1xf32>
    %cst = arith.constant 1.000000e+00 : f32
    %3 = vector.broadcast %cst : f32 to vector<8x1xf32>
    %4 = arith.addf %3, %2 : vector<8x1xf32>
    %5 = arith.divf %3, %4 : vector<8x1xf32>
    %cst_1 = arith.constant 9.99999996E-13 : f32
    %cst_2 = arith.constant 1.000000e+00 : f32
    %6 = vector.broadcast %cst_1 : f32 to vector<8x1xf32>
    %7 = arith.maximumf %6, %5 : vector<8x1xf32>
    %8 = vector.broadcast %cst_2 : f32 to vector<8x1xf32>
    %9 = arith.minimumf %8, %7 : vector<8x1xf32>
    %c0_3 = arith.constant 0 : index
    %c0_4 = arith.constant 0 : index
    %10 = vector.load %arg3[%c0_3, %c0_4] : memref<8x16xf32, #tpu.memory_space<vmem>>, vector<8x16xf32>
    %cst_5 = arith.constant dense<0xFF800000> : vector<8xf32>
    %11 = vector.multi_reduction <maximumf>, %10, %cst_5 [1] : vector<8x16xf32> to vector<8xf32>
    %12 = vector.shape_cast %11 : vector<8xf32> to vector<8x1xf32>
    %13 = vector.broadcast %12 : vector<8x1xf32> to vector<8x16xf32>
    %14 = arith.subf %10, %13 : vector<8x16xf32>
    %15 = math.exp %14 : vector<8x16xf32>
    %cst_6 = arith.constant dense<0.000000e+00> : vector<8xf32>
    %16 = vector.multi_reduction <add>, %15, %cst_6 [1] : vector<8x16xf32> to vector<8xf32>
    %17 = vector.shape_cast %16 : vector<8xf32> to vector<8x1xf32>
    %18 = tpu.reciprocal %17 {approx = true} : vector<8x1xf32> -> vector<8x1xf32>
    %19 = vector.broadcast %18 : vector<8x1xf32> to vector<8x16xf32>
    %20 = arith.mulf %15, %19 : vector<8x16xf32>
    %cst_7 = arith.constant 9.99999996E-13 : f32
    %cst_8 = arith.constant 1.000000e+00 : f32
    %21 = vector.broadcast %cst_7 : f32 to vector<8x16xf32>
    %22 = arith.maximumf %21, %20 : vector<8x16xf32>
    %23 = vector.broadcast %cst_8 : f32 to vector<8x16xf32>
    %24 = arith.minimumf %23, %22 : vector<8x16xf32>
    %c0_9 = arith.constant 0 : index
    %c0_10 = arith.constant 0 : index
    %25 = vector.load %arg4[%c0_9, %c0_10] : memref<8x1xi32, #tpu.memory_space<vmem>>, vector<8x1xi32>
    %26 = tpu.iota {dimensions = array<i32: 1>} : vector<8x16xi32>
    %27 = vector.broadcast %25 : vector<8x1xi32> to vector<8x16xi32>
    %28 = arith.cmpi eq, %26, %27 : vector<8x16xi32>
    %cst_11 = arith.constant 1.000000e+00 : f32
    %cst_12 = arith.constant 9.99999974E-5 : f32
    %29 = vector.broadcast %cst_11 : f32 to vector<8x16xf32>
    %30 = vector.broadcast %cst_12 : f32 to vector<8x16xf32>
    %31 = arith.select %28, %29, %30 : vector<8x16xi1>, vector<8x16xf32>
    %cst_13 = arith.constant 0.000000e+00 : f32
    %cst_14 = arith.constant -9.21034049 : f32
    %32 = vector.broadcast %cst_13 : f32 to vector<8x16xf32>
    %33 = vector.broadcast %cst_14 : f32 to vector<8x16xf32>
    %34 = arith.select %28, %32, %33 : vector<8x16xi1>, vector<8x16xf32>
    %35 = vector.broadcast %9 : vector<8x1xf32> to vector<8x16xf32>
    %36 = arith.mulf %35, %24 : vector<8x16xf32>
    %cst_15 = arith.constant 1.000000e+00 : f32
    %37 = vector.broadcast %cst_15 : f32 to vector<8x1xf32>
    %38 = arith.subf %37, %9 : vector<8x1xf32>
    %39 = vector.broadcast %38 : vector<8x1xf32> to vector<8x16xf32>
    %40 = arith.mulf %39, %31 : vector<8x16xf32>
    %41 = arith.addf %36, %40 : vector<8x16xf32>
    %cst_16 = arith.constant 1.000000e-07 : f32
    %cst_17 = arith.constant 1.000000e+00 : f32
    %42 = vector.broadcast %cst_16 : f32 to vector<8x16xf32>
    %43 = arith.maximumf %42, %41 : vector<8x16xf32>
    %44 = vector.broadcast %cst_17 : f32 to vector<8x16xf32>
    %45 = arith.minimumf %44, %43 : vector<8x16xf32>
    %46 = math.log %45 : vector<8x16xf32>
    %47 = arith.mulf %46, %31 : vector<8x16xf32>
    %48 = arith.mulf %45, %34 : vector<8x16xf32>
    %cst_18 = arith.constant 1.000000e-01 : f32
    %49 = vector.broadcast %cst_18 : f32 to vector<8x16xf32>
    %50 = arith.mulf %49, %48 : vector<8x16xf32>
    %51 = arith.addf %47, %50 : vector<8x16xf32>
    %cst_19 = arith.constant dense<0.000000e+00> : vector<8xf32>
    %52 = vector.multi_reduction <add>, %51, %cst_19 [1] : vector<8x16xf32> to vector<8xf32>
    %53 = vector.shape_cast %52 : vector<8xf32> to vector<8x1xf32>
    %54 = math.log %9 : vector<8x1xf32>
    %c8_i32 = arith.constant 8 : i32
    %55 = arith.muli %arg0, %c8_i32 : i32
    %56 = tpu.iota {dimensions = array<i32: 0>} : vector<8x1xi32>
    %57 = vector.broadcast %55 : i32 to vector<8x1xi32>
    %58 = arith.addi %57, %56 : vector<8x1xi32>
    %c0_20 = arith.constant 0 : index
    %59 = memref.load %arg1[%c0_20] : memref<1xi32, #tpu.memory_space<smem>>
    %60 = vector.broadcast %59 : i32 to vector<8x1xi32>
    %61 = arith.cmpi slt, %58, %60 : vector<8x1xi32>
    %cst_21 = arith.constant 0.000000e+00 : f32
    %62 = vector.broadcast %cst_21 : f32 to vector<8x1xf32>
    %63 = arith.select %61, %53, %62 : vector<8x1xi1>, vector<8x1xf32>
    %64 = vector.shape_cast %63 : vector<8x1xf32> to vector<1x8x1xf32>
    %cst_22 = arith.constant dense<0.000000e+00> : vector<1xf32>
    %65 = vector.multi_reduction <add>, %64, %cst_22 [1, 2] : vector<1x8x1xf32> to vector<1xf32>
    %66 = vector.shape_cast %65 : vector<1xf32> to vector<1x1x1xf32>
    %67 = vector.extract %66[0, 0, 0] : f32 from vector<1x1x1xf32>
    %cst_23 = arith.constant 0.000000e+00 : f32
    %68 = vector.broadcast %cst_23 : f32 to vector<8x1xf32>
    %69 = arith.select %61, %54, %68 : vector<8x1xi1>, vector<8x1xf32>
    %70 = vector.shape_cast %69 : vector<8x1xf32> to vector<1x8x1xf32>
    %cst_24 = arith.constant dense<0.000000e+00> : vector<1xf32>
    %71 = vector.multi_reduction <add>, %70, %cst_24 [1, 2] : vector<1x8x1xf32> to vector<1xf32>
    %72 = vector.shape_cast %71 : vector<1xf32> to vector<1x1x1xf32>
    %73 = vector.extract %72[0, 0, 0] : f32 from vector<1x1x1xf32>
    %74 = tpu.iota {dimensions = array<i32: 1>} : vector<1x8x128xi32>
    %75 = vector.broadcast %67 : f32 to vector<1x8x128xf32>
    %76 = vector.broadcast %73 : f32 to vector<1x8x128xf32>
    %c0_i32 = arith.constant 0 : i32
    %77 = vector.broadcast %c0_i32 : i32 to vector<1x8x128xi32>
    %78 = arith.cmpi eq, %74, %77 : vector<1x8x128xi32>
    %79 = arith.select %78, %75, %76 : vector<1x8x128xi1>, vector<1x8x128xf32>
    %c0_25 = arith.constant 0 : index
    %c0_26 = arith.constant 0 : index
    %c0_27 = arith.constant 0 : index
    %80 = vector.load %arg5[%c0_25, %c0_26, %c0_27] : memref<1x8x128xf32, #tpu.memory_space<vmem>>, vector<1x8x128xf32>
    tpu.vector_store %arg5[%c0_25, %c0_26, %c0_27], %79 {strides = array<i32>} : memref<1x8x128xf32, #tpu.memory_space<vmem>>, vector<1x8x128xf32>,
    return
  }
  func.func @transform_0(%arg0: i32) -> i32 {
    %c0_i32 = arith.constant 0 : i32
    %c0_i32_0 = arith.constant 0 : i32
    return %c0_i32 : i32
  }
  func.func @transform_1(%arg0: i32) -> (i32, i32) {
    %c0_i32 = arith.constant 0 : i32
    %c0_i32_0 = arith.constant 0 : i32
    return %arg0, %c0_i32 : i32, i32
  }
  func.func @transform_2(%arg0: i32) -> (i32, i32) {
    %c0_i32 = arith.constant 0 : i32
    %c0_i32_0 = arith.constant 0 : i32
    return %arg0, %c0_i32 : i32, i32
  }
  func.func @transform_3(%arg0: i32) -> (i32, i32) {
    %c0_i32 = arith.constant 0 : i32
    %c0_i32_0 = arith.constant 0 : i32
    return %arg0, %c0_i32 : i32, i32
  }
  func.func @transform_4(%arg0: i32) -> (i32, i32, i32) {
    %c0_i32 = arith.constant 0 : i32
    %c0_i32_0 = arith.constant 0 : i32
    %c0_i32_1 = arith.constant 0 : i32
    return %arg0, %c0_i32, %c0_i32_0 : i32, i32, i32
  }
}

</mosaic_0001>

<bundles_post_ra>
// kernel: tpu_custom_call.1
= control target key start
LH: loop header
LB: loop body
LE: loop exit
PB: predicated region body
PF: predicated region fallthrough
CT: control target
= control target key end

     0   :  { %vm29_vm0 = vcmask 130048   ;;  %s232_s0 = inlined_call_operand.<no memory space> [shape: s32[1], index: 0, kind: input, shape index: {}]   ;;  %s233_s1 = inlined_call_operand.vmem [shape: f32[8,1], index: 1, kind: input, shape index: {}]   ;;  %s234_s2 = inlined_call_operand.vmem [shape: f32[8,16], index: 2, kind: input, shape index: {}]   ;;  %s235_s3 = inlined_call_operand.vmem [shape: s32[8,1], index: 3, kind: input, shape index: {}]   ;;  %s236_s4 = inlined_call_operand.hbm [shape: f32[1,8,128], index: 4, kind: output, shape index: {}]  }
   0x1   :  { %v28_v0 = vld [vmem:[%s234_s2] sm:$0xff] }
   0x2   :  { %10 = vsyncpa [#allocation4], 0  ;;  %v30_v1 = vsel %vm29_vm0, %v28_v0, -inf  ;;  %v19_v2 = vld [vmem:[%s233_s1] sm:$0xff]  ;;  %v176_v5 = vmov 0   ;;  %v44_v18 = vlaneseq  ;;  %v85_v45 = vstv %s232_s0 }
   0x3   :  { %31 = vmax.xlane.f32.xlu0 %v30_v1  ;;  %v129_v3 = vmul.f32 -1.442695, %v19_v2  ;;  %v43_v4 = vld [vmem:[%s235_s3] sm:$0xff]  ;;  %138 = vset.pattern.permute.xlu1 %v176_v5  ;;  %v177_v24 = vmov 0.0001   ;;  %vm88_vm3 = vcmask 7168  }
   0x4   :  { %139 = vset.pattern.permute.xlu0 %v176_v5  ;;  %47 = vperm.xlu1 %138, %v43_v4   ;;  %v45_v19 = vand.u32 127, %v44_v18  ;;  %v178_v34 = vmov -9.2103405   ;;  %v81_v44 = vshrl.u32 %v44_v18, 7  ;;  %s179_s3 = smov [#allocation3]  }
   0x5   :  { %140 = vpow2.f32 %v129_v3  ;;  %s121_s21 = sshll.u32 %s179_s3, 4  ;;  %s122_s21 = int_to_ptr.vmem [resolvable:$true] %s121_s21 }
   0x6   :  { %vm86_vm2 = vcmp.lt.s32.totalorder %v81_v44, %v85_v45  ;;  %vm112_vm4 = vcmp.eq.s32.totalorder %v81_v44, 0  ;;  %s152_s23 = scalar_lea.vmem %s122_s21, 128  ;;  %p157_p1 = scmp.lt.s32.totalorder %s122_s21, %s122_s21 }
   0x7   :  { %p153_p0 = scmp.ne.s32.totalorder %s122_s21, %s152_s23  ;;  %p158_p2 = scmp.lt.s32.totalorder %s152_s23, %s152_s23 }
   0x9   :  { %p159_p3 = por %p158_p2, %p157_p1 }
   0xb   :  { %p160_p4 = pnand %p159_p3, %p153_p0 }
   0xf   :  { %v141_v6 = vpop.eup %140 }
  0x10   :  { %v23_v7 = vadd.f32 1.0, %v141_v6 }
  0x12   :  { %142 = vrcp.f32 %v23_v7 }
  0x1c   :  { %v143_v8 = vpop.eup %142 }
  0x1d   :  { %v26_v9 = vmax.f32 %v143_v8, 1e-12 }
  0x1f   :  { %v27_v10 = vmin.f32 %v26_v9, 1.0 }
  0x21   :  { %54 = vperm.xlu1 %138, %v27_v10   ;;  %v58_v16 = vsub.f32 1.0, %v27_v10 }
  0x83   :  { %v48_v21 = vpop.permute.xlu1 %47 }
  0x84   :  { %vm49_vm1 = vcmp.eq.s32.totalorder %v45_v19, %v48_v21 }
  0x85   :  { %v50_v25 = vsel %vm49_vm1, 1.0, %v177_v24  ;;  %v51_v35 = vsel %vm49_vm1, 0.0, %v178_v34 }
  0x90   :  { %v32_v11 = vpop.xlane.xlu0 %31 }
  0x91   :  { %v33_v12 = vsub.f32 %v28_v0, %v32_v11 }
  0x93   :  { %v34_v13 = vmul.f32 1.442695, %v33_v12 }
  0x95   :  { %144 = vpow2.f32 %v34_v13 }
  0x9f   :  { %v145_v14 = vpop.eup %144 }
  0xa0   :  { %v36_v15 = vsel %vm29_vm0, %v145_v14, 0.0  ;;  %v55_v28 = vpop.permute.xlu1 %54 }
  0xa1   :  { %37 = vadd.xlane.f32.xlu0 %v36_v15 }
  0xb7   :  { %61 = vperm.xlu0 %139, %v58_v16  }
 0x12e   :  { %v38_v17 = vpop.xlane.xlu0 %37 }
 0x12f   :  { %146 = vrcp.f32 %v38_v17 }
 0x136   :  { %v62_v26 = vpop.permute.xlu0 %61 }
 0x137   :  { %v64_v30 = vmul.f32 %v62_v26, %v50_v25 }
 0x139   :  { %v147_v20 = vpop.eup %146 }
 0x13a   :  { %v40_v22 = vmul.f32 %v147_v20, %v145_v14 }
 0x13c   :  { %v41_v23 = vmax.f32 %v40_v22, 1e-12 }
 0x13e   :  { %v42_v27 = vmin.f32 %v41_v23, 1.0 }
 0x140   :  { %v57_v29 = vmul.f32 %v55_v28, %v42_v27 }
 0x142   :  { %v65_v31 = vadd.f32 %v64_v30, %v57_v29 }
 0x144   :  { %v66_v32 = vmax.f32 %v65_v31, 1e-07 }
 0x146   :  { %v67_v33 = vmin.f32 %v66_v32, 1.0 }
 0x148   :  { %148 = vlog2.f32 %v67_v33  ;;  %v71_v36 = vmul.f32 %v67_v33, %v51_v35 }
 0x149   :  { %150 = vlog2.f32 %v27_v10 }
 0x14a   :  { %v72_v40 = vmul.f32 0.1, %v71_v36 }
 0x152   :  { %v149_v37 = vpop.eup %148 }
 0x153   :  { %v69_v38 = vmul.f32 0.6931472, %v149_v37  ;;  %v151_v43 = vpop.eup %150 }
 0x154   :  { %v78_v46 = vmul.f32 0.6931472, %v151_v43 }
 0x155   :  { %v70_v39 = vmul.f32 %v69_v38, %v50_v25 }
 0x156   :  { %v99_v49 = vsel %vm86_vm2, %v78_v46, 0.0 }
 0x157   :  { %v73_v41 = vadd.f32 %v72_v40, %v70_v39  ;;  %v100_v51 = vsel %vm88_vm3, %v99_v49, 0.0 }
 0x159   :  { %v74_v42 = vsel %vm29_vm0, %v73_v41, 0.0 }
 0x15a   :  { %75 = vadd.xlane.f32.xlu1 %v74_v42 }
 0x1e7   :  { %v76_v47 = vpop.xlane.xlu1 %75 }
 0x1e8   :  { %v87_v48 = vsel %vm86_vm2, %v76_v47, 0.0 }
 0x1e9   :  { %v89_v50 = vsel %vm88_vm3, %v87_v48, 0.0 }
 0x1ea   :  { %90 = vadd.xlane.f32.xlu1 %v89_v50 }
 0x1ee   :  { %101 = vadd.xlane.f32.xlu1 %v100_v51 }
 0x277   :  { %v91_v52 = vpop.xlane.xlu1 %90 }
 0x278   :  { %v92_v53 = vrot.slane %v91_v52, 4 }
 0x27a   :  { %v93_v54 = vadd.f32 %v92_v53, %v91_v52 }
 0x27b   :  { %v102_v55 = vpop.xlane.xlu1 %101 }
 0x27c   :  { %v94_v56 = vrot.slane %v93_v54, 2  ;;  %v103_v57 = vrot.slane %v102_v55, 4 }
 0x27e   :  { %v104_v58 = vadd.f32 %v103_v57, %v102_v55  ;;  %v95_v59 = vadd.f32 %v94_v56, %v93_v54 }
 0x280   :  { %v105_v60 = vrot.slane %v104_v58, 2  ;;  %v96_v61 = vrot.slane %v95_v59, 1 }
 0x282   :  { %v106_v62 = vadd.f32 %v105_v60, %v104_v58  ;;  %v97_v63 = vadd.f32 %v96_v61, %v95_v59 }
 0x284   :  { %130 = vpush %v97_v63  ;;  %v107_v0 = vrot.slane %v106_v62, 1 }
 0x286   :  { %v108_v1 = vadd.f32 %v107_v0, %v106_v62 }
 0x288   :  { %132 = vpush %v108_v1 }
 0x2b5   :  { %s131_s0 = spop %130 }
 0x2b6   :  { %v110_v2 = vstv %s131_s0 }
 0x2b9   :  { %s133_s22 = spop %132 }
 0x2ba   :  { %v111_v3 = vstv %s133_s22 }
 0x2bb   :  { %v113_v4 = vsel %vm112_vm4, %v110_v2, %v111_v3 }
 0x2bc   :  { %114 = vst [vmem:[#allocation3] sm:$0xff] %v113_v4 }
 0x2bd   :  { %163 = shalt.err (!%p160_p4)
}
 0x2be   :  { %s164_s26 = scalar_lea.hbm %s236_s4, 128 }
 0x2bf   :  { %p165_p5 = scmp.ne.s32.totalorder %s236_s4, %s164_s26  ;;  %p168_p6 = scmp.lt.u32.totalorder %s164_s26, %s236_s4 }
 0x2c1   :  { %p170_p7 = pnand %p168_p6, %p165_p5 }
 0x2c3   :  { %173 = shalt.err (!%p170_p7)
}
 0x2c4   :  { %124 = dma.vmem_to_hbm [thread:$0]  %s122_s21, 128, %s236_s4, [#allocation4]  }
 0x2c5   :  { %174 = dma.done.wait [#allocation4], 128  }
 0x2c6   :  { %175 = vsyncadd [#allocation4], 4294967168 }
 0x2c7   :  { %128 = vsyncpa [#allocation4], 1 }

</bundles_post_ra>
